<compile_context>
chip_gen: v6e
topology: v6e:2x2x1
jax: 0.10.0
libtpu: 0.0.40
codegen_flags: <defaults>
</compile_context>

<pallas_src>
import functools

import jax
import jax.numpy as jnp
from jax import lax
from jax.experimental import pallas as pl
from jax.experimental.pallas import tpu as pltpu


def _round_up(n, m):
    return ((n + m - 1) // m) * m


def _pad_cols(a, target):
    pad = target - a.shape[-1]
    if pad == 0:
        return a
    return jnp.pad(a, [(0, 0)] * (a.ndim - 1) + [(0, pad)])


def _pad_rows(a, target):
    pad = target - a.shape[0]
    if pad == 0:
        return a
    return jnp.pad(a, [(0, pad)] + [(0, 0)] * (a.ndim - 1))


def _vmem_limit_bytes():
    try:
        cap = int(pltpu.get_tpu_info().vmem_capacity_bytes)
    except Exception:
        cap = 64 * 1024 * 1024                 # conservative: v7x per-TensorCore VMEM
    # ~75% of physical VMEM leaves headroom for Mosaic internal scratch:
    #   v7x (64 MiB) -> 48 MiB ; v5e/v6e (128 MiB) -> 96 MiB.
    return max(int(cap * 0.75), 32 * 1024 * 1024)


def _grn_kernel(use_project, units, up, approx_sigmoid,
                x_ref,
                w_x_ref, b_x_ref,
                w_lin_ref, b_lin_ref,
                w_g_ref, b_g_ref,
                gamma_ref, beta_ref,
                o_ref):
    x = x_ref[...]                               # (TB, x_feat), matmul dtype

    # Fused (elu_linear | project) matmul on the x operand, f32 accumulation.
    hx = jnp.dot(x, w_x_ref[...], preferred_element_type=jnp.float32) + b_x_ref[...]
    if use_project:
        h = hx[:, :up]
        res = hx[:, up:]
    else:
        h = hx
        # Identity residual carried in matmul_dtype (bf16 by default); use
        # matmul_dtype=f32 if a full-precision identity residual is required.
        res = x.astype(jnp.float32)

    # ELU (alpha = 1).  exp(h)-1 kept (instead of expm1) for guaranteed Mosaic
    # lowering; absolute error near h=0 is ~1e-7 in f32, negligible here.
    h = jnp.where(h > 0, h, jnp.exp(h) - 1.0)

    # Second linear.
    h = jnp.dot(h.astype(w_lin_ref.dtype), w_lin_ref[...],
                preferred_element_type=jnp.float32) + b_lin_ref[...]

    # TODO(synk): training-mode dropout (random masking) not implemented; eval semantics only.

    # Fused GatedLinearUnit: [linear1 | linear2] in one matmul, then split + gate.
    g = jnp.dot(h.astype(w_g_ref.dtype), w_g_ref[...],
                preferred_element_type=jnp.float32) + b_g_ref[...]
    g1 = g[:, :up]
    g2 = g[:, up:]
    # sigmoid: exp and (approx) reciprocal both land on the EUP slot.
    sig = pl.reciprocal(1.0 + jnp.exp(-g2), approx=approx_sigmoid)
    y = res + g1 * sig                           # padded lanes of y are exactly 0

    # One-pass LayerNorm statistics over the real `units` lanes (eps = 1e-5).
    # Padded lanes of y are exactly zero (zero-padded weight columns/biases),
    # so sum(y) and sum(y*y) over all `up` lanes equal the sums over `units`.
    inv_n = 1.0 / units
    mean = jnp.sum(y, axis=-1, keepdims=True) * inv_n
    ey2 = jnp.sum(y * y, axis=-1, keepdims=True) * inv_n
    var = jnp.maximum(ey2 - mean * mean, 0.0)
    y_norm = (y - mean) * lax.rsqrt(var + 1e-5)
    out = y_norm * gamma_ref[...] + beta_ref[...]
    # Unpadded store: only the real `units` lanes are written back to HBM.
    o_ref[...] = out[:, :units].astype(o_ref.dtype)


def gated_residual_network(x, params, *, units, batch_tile=None,
                           matmul_dtype=jnp.bfloat16, out_dtype=None,
                           approx_sigmoid=True):
    """x: [B, input_size] -> [B, units] (eval-mode GatedResidualNetwork)."""
    B, input_size = x.shape
    use_project = (input_size != units)
    up = _round_up(units, 128)                   # lane-dense feature width
    out_dtype = x.dtype if out_dtype is None else out_dtype
    f32 = jnp.float32

    (w_elu, b_elu, w_lin, b_lin, w_proj, b_proj,
     w_g1, b_g1, w_g2, b_g2, gamma, beta) = params

    # ---------- host-side weight packing / zero-padding (const-folded by XLA) ----------
    # Invariant relied on by the unmasked LayerNorm sums: every padded weight
    # column / bias lane is exactly zero, so padded lanes of y stay zero.
    w_elu_p = _pad_cols(w_elu, up)
    w_lin_p = _pad_cols(_pad_rows(w_lin, up), up).astype(matmul_dtype)     # (up, up)
    b_lin_p = _pad_cols(b_lin, up).astype(f32)
    w_g = jnp.concatenate([_pad_cols(_pad_rows(w_g1, up), up),
                           _pad_cols(_pad_rows(w_g2, up), up)],
                          axis=1).astype(matmul_dtype)                     # (up, 2*up)
    b_g = jnp.concatenate([_pad_cols(b_g1, up), _pad_cols(b_g2, up)],
                          axis=1).astype(f32)                              # (1, 2*up)
    gamma_p = _pad_cols(gamma, up).astype(f32)
    beta_p = _pad_cols(beta, up).astype(f32)

    if use_project:
        # fuse elu_linear | project into a single (input_size, 2*up) matmul
        w_x = jnp.concatenate([w_elu_p, _pad_cols(w_proj, up)], axis=1).astype(matmul_dtype)
        b_x = jnp.concatenate([_pad_cols(b_elu, up), _pad_cols(b_proj, up)],
                              axis=1).astype(f32)
        x_in = x.astype(matmul_dtype)
        x_feat = input_size
    else:
        # identity residual: projection weights are not loaded at all
        w_x = _pad_rows(w_elu_p, up).astype(matmul_dtype)                  # (up, up)
        b_x = _pad_cols(b_elu, up).astype(f32)
        x_in = _pad_cols(x, up).astype(matmul_dtype)
        x_feat = up

    # ---------- VMEM budget & batch tiling ----------
    vmem_limit = _vmem_limit_bytes()
    op_bytes = jnp.dtype(matmul_dtype).itemsize
    out_bytes = jnp.dtype(out_dtype).itemsize
    weight_bytes = ((w_x.size + w_lin_p.size + w_g.size) * op_bytes
                    + (b_x.size + b_lin_p.size + b_g.size
                       + gamma_p.size + beta_p.size) * 4)
    # per-row VMEM: double-buffered x tile + double-buffered out tile + ~8 live
    # f32 intermediates of width `up` (hx/g are 2*up wide; h/res/y/y_norm up wide).
    per_row = 2 * x_feat * op_bytes + 2 * units * out_bytes + 8 * up * 4
    if weight_bytes + 8 * per_row > vmem_limit:
        # TODO(synk): tile the 2*up output columns of w_x / w_g over a second
        # grid axis for very large `units` (weights do not fit VMEM-resident,
        # most likely on v7x's 64 MiB budget).
        raise ValueError(f"units={units}: resident weights ({weight_bytes} B) "
                         f"exceed the VMEM limit ({vmem_limit} B)")
    if batch_tile is None:
        budget = vmem_limit - weight_bytes - (4 << 20)   # Mosaic scratch headroom
        batch_tile = max(8, min(2048, budget // per_row))

    tb = min(int(batch_tile), B)
    if B >= 16:
        # ensure >= 2 grid steps so both v7x TensorCores get work (near-zero
        # cost on the single-TC v5e/v6e: one extra ~0.35 us grid step).
        tb = min(tb, _round_up(pl.cdiv(B, 2), 8))
    if tb < B:
        tb = max(8, (tb // 8) * 8)               # sublane-aligned tile
    grid = (pl.cdiv(B, tb),)
    # NOTE: if tb does not divide B, the tail grid step computes on junk rows of
    # the padded block (exp() may produce inf there); those rows are never
    # copied back to HBM, so it is benign.

    kernel = functools.partial(_grn_kernel, use_project, units, up, approx_sigmoid)
    args = (x_in, w_x, b_x, w_lin_p, b_lin_p, w_g, b_g, gamma_p, beta_p)

    def build(weight_mode):
        def const2d(shape):                      # grid-invariant, VMEM-resident
            if weight_mode is None:
                return pl.BlockSpec(shape, lambda i: (0, 0))
            return pl.BlockSpec(shape, lambda i: (0, 0), pipeline_mode=weight_mode)

        return pl.pallas_call(
            kernel,
            out_shape=jax.ShapeDtypeStruct((B, units), out_dtype),
            grid_spec=pltpu.PrefetchScalarGridSpec(
                num_scalar_prefetch=0,
                grid=grid,
                in_specs=[
                    pl.BlockSpec((tb, x_feat), lambda i: (i, 0)),   # x tile (streamed)
                    const2d(w_x.shape), const2d(b_x.shape),         # fused elu|project
                    const2d(w_lin_p.shape), const2d(b_lin_p.shape), # second linear
                    const2d(w_g.shape), const2d(b_g.shape),         # fused GLU
                    const2d(gamma_p.shape), const2d(beta_p.shape),  # layer norm
                ],
                out_specs=pl.BlockSpec((tb, units), lambda i: (i, 0)),  # unpadded store
            ),
            compiler_params=pltpu.CompilerParams(
                dimension_semantics=("parallel",),    # megacore-shard batch tiles on v7x
                vmem_limit_bytes=int(vmem_limit),
            ),
        )

    try:
        # Single-buffer the grid-invariant weights/biases: halves their VMEM
        # footprint, freeing room for larger batch tiles.
        return build(pl.Buffered(1))(*args)
    except Exception:
        # pl.Buffered(1) unsupported on this jax/libtpu -> default double buffering.
        return build(None)(*args)


def init_params(key, input_size, units):
    ks = jax.random.split(key, 10)

    def lin(k, fan_in, fan_out):
        bound = 1.0 / jnp.sqrt(fan_in)
        kw, kb = jax.random.split(k)
        w = jax.random.uniform(kw, (fan_in, fan_out), jnp.float32, -bound, bound)
        b = jax.random.uniform(kb, (1, fan_out), jnp.float32, -bound, bound)
        return w, b

    w_elu, b_elu = lin(ks[0], input_size, units)
    w_lin, b_lin = lin(ks[1], units, units)
    w_proj, b_proj = lin(ks[2], input_size, units)
    w_g1, b_g1 = lin(ks[3], units, units)
    w_g2, b_g2 = lin(ks[4], units, units)
    gamma = jnp.ones((1, units), jnp.float32)
    beta = jnp.zeros((1, units), jnp.float32)
    return (w_elu, b_elu, w_lin, b_lin, w_proj, b_proj,
            w_g1, b_g1, w_g2, b_g2, gamma, beta)


def reference(x, params):
    (w_elu, b_elu, w_lin, b_lin, w_proj, b_proj,
     w_g1, b_g1, w_g2, b_g2, gamma, beta) = params
    units = w_lin.shape[0]
    h = x @ w_elu + b_elu
    h = jnp.where(h > 0, h, jnp.exp(h) - 1.0)
    h = h @ w_lin + b_lin
    res = x @ w_proj + b_proj if x.shape[-1] != units else x
    y = res + (h @ w_g1 + b_g1) * jax.nn.sigmoid(h @ w_g2 + b_g2)
    mean = y.mean(-1, keepdims=True)
    var = ((y - mean) ** 2).mean(-1, keepdims=True)
    return (y - mean) / jnp.sqrt(var + 1e-5) * gamma + beta


if __name__ == "__main__":
    key = jax.random.PRNGKey(0)
    kx1, kp1, kx2, kp2 = jax.random.split(key, 4)

    # Case 1: input_size != units -> fused (elu|project) path, multi-step batch grid.
    # f32 operands + exact sigmoid for a tight check against the reference.
    B1, in1, units1 = 64, 16, 32
    x1 = jax.random.normal(kx1, (B1, in1), jnp.float32)
    params1 = init_params(kp1, in1, units1)
    out1 = jax.block_until_ready(
        gated_residual_network(x1, params1, units=units1, batch_tile=16,
                               matmul_dtype=jnp.float32, approx_sigmoid=False))
    ref1 = reference(x1, params1)
    assert out1.shape == (B1, units1)
    assert jnp.allclose(out1, ref1, atol=1e-4, rtol=1e-4), "mismatch vs reference (project path)"

    # Case 2: input_size == units -> identity residual path (no projection weights loaded).
    B2, in2, units2 = 32, 32, 32
    x2 = jax.random.normal(kx2, (B2, in2), jnp.float32)
    params2 = init_params(kp2, in2, units2)
    out2 = jax.block_until_ready(
        gated_residual_network(x2, params2, units=units2,
                               matmul_dtype=jnp.float32, approx_sigmoid=False))
    ref2 = reference(x2, params2)
    assert out2.shape == (B2, units2)
    assert jnp.allclose(out2, ref2, atol=1e-4, rtol=1e-4), "mismatch vs reference (identity path)"

    # Case 3: default fast path — bf16 MXU operands, approx sigmoid, auto batch tile.
    out3 = jax.block_until_ready(gated_residual_network(x1, params1, units=units1))
    assert out3.shape == (B1, units1)
    assert bool(jnp.all(jnp.isfinite(out3)))
    assert float(jnp.max(jnp.abs(out3 - ref1))) < 0.5, "bf16 fast path diverged from reference"

    print("KERNEL_OK")
</pallas_src>

<mosaic_0001>
module attributes {stable_mosaic.version = 11 : i64} {
  func.func @_grn_kernel(%arg0: i32, %arg1: memref<16x16xf32, #tpu.memory_space<vmem>>, %arg2: memref<16x256xf32, #tpu.memory_space<vmem>>, %arg3: memref<1x256xf32, #tpu.memory_space<vmem>>, %arg4: memref<128x128xf32, #tpu.memory_space<vmem>>, %arg5: memref<1x128xf32, #tpu.memory_space<vmem>>, %arg6: memref<128x256xf32, #tpu.memory_space<vmem>>, %arg7: memref<1x256xf32, #tpu.memory_space<vmem>>, %arg8: memref<1x128xf32, #tpu.memory_space<vmem>>, %arg9: memref<1x128xf32, #tpu.memory_space<vmem>>, %arg10: memref<16x32xf32, #tpu.memory_space<vmem>>) attributes {dimension_semantics = [#tpu.dimension_semantics<parallel>], iteration_bounds = array<i64: 4>, scalar_prefetch = 0 : i64, scratch_operands = 0 : i64, tpu.core_type = #tpu.core_type<tc>, window_params = [{transform_indices = @transform_0, window_bounds = array<i64: 16, 16>}, {pipeline_mode = #tpu.pipeline_mode<synchronous>, transform_indices = @transform_1, window_bounds = array<i64: 16, 256>}, {pipeline_mode = #tpu.pipeline_mode<synchronous>, transform_indices = @transform_2, window_bounds = array<i64: 1, 256>}, {pipeline_mode = #tpu.pipeline_mode<synchronous>, transform_indices = @transform_3, window_bounds = array<i64: 128, 128>}, {pipeline_mode = #tpu.pipeline_mode<synchronous>, transform_indices = @transform_4, window_bounds = array<i64: 1, 128>}, {pipeline_mode = #tpu.pipeline_mode<synchronous>, transform_indices = @transform_5, window_bounds = array<i64: 128, 256>}, {pipeline_mode = #tpu.pipeline_mode<synchronous>, transform_indices = @transform_6, window_bounds = array<i64: 1, 256>}, {pipeline_mode = #tpu.pipeline_mode<synchronous>, transform_indices = @transform_7, window_bounds = array<i64: 1, 128>}, {pipeline_mode = #tpu.pipeline_mode<synchronous>, transform_indices = @transform_8, window_bounds = array<i64: 1, 128>}, {transform_indices = @transform_9, window_bounds = array<i64: 16, 32>}]} {
    %c0 = arith.constant 0 : index
    %c0_0 = arith.constant 0 : index
    %0 = vector.load %arg1[%c0, %c0_0] : memref<16x16xf32, #tpu.memory_space<vmem>>, vector<16x16xf32>
    %c0_1 = arith.constant 0 : index
    %c0_2 = arith.constant 0 : index
    %1 = vector.load %arg2[%c0_1, %c0_2] : memref<16x256xf32, #tpu.memory_space<vmem>>, vector<16x256xf32>
    %cst = arith.constant dense<0.000000e+00> : vector<16x256xf32>
    %2 = tpu.matmul %0, %1, %cst {dimension_numbers = #tpu.dot_dimension_numbers<[1], [0], [0], [1], [0, 0, 1, 1], [], []>} : vector<16x16xf32>, vector<16x256xf32>, vector<16x256xf32> -> vector<16x256xf32>
    %c0_3 = arith.constant 0 : index
    %c0_4 = arith.constant 0 : index
    %3 = vector.load %arg3[%c0_3, %c0_4] : memref<1x256xf32, #tpu.memory_space<vmem>>, vector<1x256xf32>
    %4 = vector.broadcast %3 : vector<1x256xf32> to vector<16x256xf32>
    %5 = arith.addf %2, %4 : vector<16x256xf32>
    %6 = vector.extract_strided_slice %5 {offsets = [0, 0], sizes = [16, 128], strides = [1, 1]} : vector<16x256xf32> to vector<16x128xf32>
    %7 = vector.extract_strided_slice %5 {offsets = [0, 128], sizes = [16, 128], strides = [1, 1]} : vector<16x256xf32> to vector<16x128xf32>
    %cst_5 = arith.constant 0.000000e+00 : f32
    %8 = vector.broadcast %cst_5 : f32 to vector<16x128xf32>
    %9 = arith.cmpf ogt, %6, %8 : vector<16x128xf32>
    %10 = math.exp %6 : vector<16x128xf32>
    %cst_6 = arith.constant 1.000000e+00 : f32
    %11 = vector.broadcast %cst_6 : f32 to vector<16x128xf32>
    %12 = arith.subf %10, %11 : vector<16x128xf32>
    %13 = arith.select %9, %6, %12 : vector<16x128xi1>, vector<16x128xf32>
    %c0_7 = arith.constant 0 : index
    %c0_8 = arith.constant 0 : index
    %14 = vector.load %arg4[%c0_7, %c0_8] : memref<128x128xf32, #tpu.memory_space<vmem>>, vector<128x128xf32>
    %cst_9 = arith.constant dense<0.000000e+00> : vector<16x128xf32>
    %15 = tpu.matmul %13, %14, %cst_9 {dimension_numbers = #tpu.dot_dimension_numbers<[1], [0], [0], [1], [0, 0, 1, 1], [], []>} : vector<16x128xf32>, vector<128x128xf32>, vector<16x128xf32> -> vector<16x128xf32>
    %c0_10 = arith.constant 0 : index
    %c0_11 = arith.constant 0 : index
    %16 = vector.load %arg5[%c0_10, %c0_11] : memref<1x128xf32, #tpu.memory_space<vmem>>, vector<1x128xf32>
    %17 = vector.broadcast %16 : vector<1x128xf32> to vector<16x128xf32>
    %18 = arith.addf %15, %17 : vector<16x128xf32>
    %c0_12 = arith.constant 0 : index
    %c0_13 = arith.constant 0 : index
    %19 = vector.load %arg6[%c0_12, %c0_13] : memref<128x256xf32, #tpu.memory_space<vmem>>, vector<128x256xf32>
    %cst_14 = arith.constant dense<0.000000e+00> : vector<16x256xf32>
    %20 = tpu.matmul %18, %19, %cst_14 {dimension_numbers = #tpu.dot_dimension_numbers<[1], [0], [0], [1], [0, 0, 1, 1], [], []>} : vector<16x128xf32>, vector<128x256xf32>, vector<16x256xf32> -> vector<16x256xf32>
    %c0_15 = arith.constant 0 : index
    %c0_16 = arith.constant 0 : index
    %21 = vector.load %arg7[%c0_15, %c0_16] : memref<1x256xf32, #tpu.memory_space<vmem>>, vector<1x256xf32>
    %22 = vector.broadcast %21 : vector<1x256xf32> to vector<16x256xf32>
    %23 = arith.addf %20, %22 : vector<16x256xf32>
    %24 = vector.extract_strided_slice %23 {offsets = [0, 0], sizes = [16, 128], strides = [1, 1]} : vector<16x256xf32> to vector<16x128xf32>
    %25 = vector.extract_strided_slice %23 {offsets = [0, 128], sizes = [16, 128], strides = [1, 1]} : vector<16x256xf32> to vector<16x128xf32>
    %cst_17 = arith.constant 0.000000e+00 : f32
    %26 = vector.broadcast %cst_17 : f32 to vector<16x128xf32>
    %27 = arith.subf %26, %25 : vector<16x128xf32>
    %28 = math.exp %27 : vector<16x128xf32>
    %cst_18 = arith.constant 1.000000e+00 : f32
    %29 = vector.broadcast %cst_18 : f32 to vector<16x128xf32>
    %30 = arith.addf %29, %28 : vector<16x128xf32>
    %31 = tpu.reciprocal %30 : vector<16x128xf32> -> vector<16x128xf32>
    %32 = arith.mulf %24, %31 : vector<16x128xf32>
    %33 = arith.addf %7, %32 : vector<16x128xf32>
    %cst_19 = arith.constant dense<0.000000e+00> : vector<16xf32>
    %34 = vector.multi_reduction <add>, %33, %cst_19 [1] : vector<16x128xf32> to vector<16xf32>
    %35 = vector.shape_cast %34 : vector<16xf32> to vector<16x1xf32>
    %cst_20 = arith.constant 3.125000e-02 : f32
    %36 = vector.broadcast %cst_20 : f32 to vector<16x1xf32>
    %37 = arith.mulf %35, %36 : vector<16x1xf32>
    %38 = arith.mulf %33, %33 : vector<16x128xf32>
    %cst_21 = arith.constant dense<0.000000e+00> : vector<16xf32>
    %39 = vector.multi_reduction <add>, %38, %cst_21 [1] : vector<16x128xf32> to vector<16xf32>
    %40 = vector.shape_cast %39 : vector<16xf32> to vector<16x1xf32>
    %cst_22 = arith.constant 3.125000e-02 : f32
    %41 = vector.broadcast %cst_22 : f32 to vector<16x1xf32>
    %42 = arith.mulf %40, %41 : vector<16x1xf32>
    %43 = arith.mulf %37, %37 : vector<16x1xf32>
    %44 = arith.subf %42, %43 : vector<16x1xf32>
    %cst_23 = arith.constant 0.000000e+00 : f32
    %45 = vector.broadcast %cst_23 : f32 to vector<16x1xf32>
    %46 = arith.maximumf %44, %45 : vector<16x1xf32>
    %47 = vector.broadcast %37 : vector<16x1xf32> to vector<16x128xf32>
    %48 = arith.subf %33, %47 : vector<16x128xf32>
    %cst_24 = arith.constant 9.99999974E-6 : f32
    %49 = vector.broadcast %cst_24 : f32 to vector<16x1xf32>
    %50 = arith.addf %46, %49 : vector<16x1xf32>
    %51 = math.rsqrt %50 : vector<16x1xf32>
    %52 = vector.broadcast %51 : vector<16x1xf32> to vector<16x128xf32>
    %53 = arith.mulf %48, %52 : vector<16x128xf32>
    %c0_25 = arith.constant 0 : index
    %c0_26 = arith.constant 0 : index
    %54 = vector.load %arg8[%c0_25, %c0_26] : memref<1x128xf32, #tpu.memory_space<vmem>>, vector<1x128xf32>
    %55 = vector.broadcast %54 : vector<1x128xf32> to vector<16x128xf32>
    %56 = arith.mulf %53, %55 : vector<16x128xf32>
    %c0_27 = arith.constant 0 : index
    %c0_28 = arith.constant 0 : index
    %57 = vector.load %arg9[%c0_27, %c0_28] : memref<1x128xf32, #tpu.memory_space<vmem>>, vector<1x128xf32>
    %58 = vector.broadcast %57 : vector<1x128xf32> to vector<16x128xf32>
    %59 = arith.addf %56, %58 : vector<16x128xf32>
    %60 = vector.extract_strided_slice %59 {offsets = [0, 0], sizes = [16, 32], strides = [1, 1]} : vector<16x128xf32> to vector<16x32xf32>
    %c0_29 = arith.constant 0 : index
    %c0_30 = arith.constant 0 : index
    %61 = vector.load %arg10[%c0_29, %c0_30] : memref<16x32xf32, #tpu.memory_space<vmem>>, vector<16x32xf32>
    tpu.vector_store %arg10[%c0_29, %c0_30], %60 {strides = array<i32>} : memref<16x32xf32, #tpu.memory_space<vmem>>, vector<16x32xf32>,
    return
  }
  func.func @transform_0(%arg0: i32) -> (i32, i32) {
    %c0_i32 = arith.constant 0 : i32
    %c0_i32_0 = arith.constant 0 : i32
    return %arg0, %c0_i32 : i32, i32
  }
  func.func @transform_1(%arg0: i32) -> (i32, i32) {
    %c0_i32 = arith.constant 0 : i32
    %c0_i32_0 = arith.constant 0 : i32
    %c0_i32_1 = arith.constant 0 : i32
    return %c0_i32, %c0_i32_0 : i32, i32
  }
  func.func @transform_2(%arg0: i32) -> (i32, i32) {
    %c0_i32 = arith.constant 0 : i32
    %c0_i32_0 = arith.constant 0 : i32
    %c0_i32_1 = arith.constant 0 : i32
    return %c0_i32, %c0_i32_0 : i32, i32
  }
  func.func @transform_3(%arg0: i32) -> (i32, i32) {
    %c0_i32 = arith.constant 0 : i32
    %c0_i32_0 = arith.constant 0 : i32
    %c0_i32_1 = arith.constant 0 : i32
    return %c0_i32, %c0_i32_0 : i32, i32
  }
  func.func @transform_4(%arg0: i32) -> (i32, i32) {
    %c0_i32 = arith.constant 0 : i32
    %c0_i32_0 = arith.constant 0 : i32
    %c0_i32_1 = arith.constant 0 : i32
    return %c0_i32, %c0_i32_0 : i32, i32
  }
  func.func @transform_5(%arg0: i32) -> (i32, i32) {
    %c0_i32 = arith.constant 0 : i32
    %c0_i32_0 = arith.constant 0 : i32
    %c0_i32_1 = arith.constant 0 : i32
    return %c0_i32, %c0_i32_0 : i32, i32
  }
  func.func @transform_6(%arg0: i32) -> (i32, i32) {
    %c0_i32 = arith.constant 0 : i32
    %c0_i32_0 = arith.constant 0 : i32
    %c0_i32_1 = arith.constant 0 : i32
    return %c0_i32, %c0_i32_0 : i32, i32
  }
  func.func @transform_7(%arg0: i32) -> (i32, i32) {
    %c0_i32 = arith.constant 0 : i32
    %c0_i32_0 = arith.constant 0 : i32
    %c0_i32_1 = arith.constant 0 : i32
    return %c0_i32, %c0_i32_0 : i32, i32
  }
  func.func @transform_8(%arg0: i32) -> (i32, i32) {
    %c0_i32 = arith.constant 0 : i32
    %c0_i32_0 = arith.constant 0 : i32
    %c0_i32_1 = arith.constant 0 : i32
    return %c0_i32, %c0_i32_0 : i32, i32
  }
  func.func @transform_9(%arg0: i32) -> (i32, i32) {
    %c0_i32 = arith.constant 0 : i32
    %c0_i32_0 = arith.constant 0 : i32
    return %arg0, %c0_i32 : i32, i32
  }
}

module attributes {stable_mosaic.version = 11 : i64} {
  func.func @_grn_kernel(%arg0: i32, %arg1: memref<16x16xf32, #tpu.memory_space<vmem>>, %arg2: memref<16x256xf32, #tpu.memory_space<vmem>>, %arg3: memref<1x256xf32, #tpu.memory_space<vmem>>, %arg4: memref<128x128xf32, #tpu.memory_space<vmem>>, %arg5: memref<1x128xf32, #tpu.memory_space<vmem>>, %arg6: memref<128x256xf32, #tpu.memory_space<vmem>>, %arg7: memref<1x256xf32, #tpu.memory_space<vmem>>, %arg8: memref<1x128xf32, #tpu.memory_space<vmem>>, %arg9: memref<1x128xf32, #tpu.memory_space<vmem>>, %arg10: memref<16x32xf32, #tpu.memory_space<vmem>>) attributes {dimension_semantics = [#tpu.dimension_semantics<parallel>], iteration_bounds = array<i64: 4>, scalar_prefetch = 0 : i64, scratch_operands = 0 : i64, tpu.core_type = #tpu.core_type<tc>, window_params = [{transform_indices = @transform_0, window_bounds = array<i64: 16, 16>}, {pipeline_mode = #tpu.pipeline_mode<synchronous>, transform_indices = @transform_1, window_bounds = array<i64: 16, 256>}, {pipeline_mode = #tpu.pipeline_mode<synchronous>, transform_indices = @transform_2, window_bounds = array<i64: 1, 256>}, {pipeline_mode = #tpu.pipeline_mode<synchronous>, transform_indices = @transform_3, window_bounds = array<i64: 128, 128>}, {pipeline_mode = #tpu.pipeline_mode<synchronous>, transform_indices = @transform_4, window_bounds = array<i64: 1, 128>}, {pipeline_mode = #tpu.pipeline_mode<synchronous>, transform_indices = @transform_5, window_bounds = array<i64: 128, 256>}, {pipeline_mode = #tpu.pipeline_mode<synchronous>, transform_indices = @transform_6, window_bounds = array<i64: 1, 256>}, {pipeline_mode = #tpu.pipeline_mode<synchronous>, transform_indices = @transform_7, window_bounds = array<i64: 1, 128>}, {pipeline_mode = #tpu.pipeline_mode<synchronous>, transform_indices = @transform_8, window_bounds = array<i64: 1, 128>}, {transform_indices = @transform_9, window_bounds = array<i64: 16, 32>}]} {
    %c0 = arith.constant 0 : index
    %c0_0 = arith.constant 0 : index
    %0 = vector.load %arg1[%c0, %c0_0] : memref<16x16xf32, #tpu.memory_space<vmem>>, vector<16x16xf32>
    %c0_1 = arith.constant 0 : index
    %c0_2 = arith.constant 0 : index
    %1 = vector.load %arg2[%c0_1, %c0_2] : memref<16x256xf32, #tpu.memory_space<vmem>>, vector<16x256xf32>
    %cst = arith.constant dense<0.000000e+00> : vector<16x256xf32>
    %2 = tpu.matmul %0, %1, %cst {dimension_numbers = #tpu.dot_dimension_numbers<[1], [0], [0], [1], [0, 0, 1, 1], [], []>} : vector<16x16xf32>, vector<16x256xf32>, vector<16x256xf32> -> vector<16x256xf32>
    %c0_3 = arith.constant 0 : index
    %c0_4 = arith.constant 0 : index
    %3 = vector.load %arg3[%c0_3, %c0_4] : memref<1x256xf32, #tpu.memory_space<vmem>>, vector<1x256xf32>
    %4 = vector.broadcast %3 : vector<1x256xf32> to vector<16x256xf32>
    %5 = arith.addf %2, %4 : vector<16x256xf32>
    %6 = vector.extract_strided_slice %5 {offsets = [0, 0], sizes = [16, 128], strides = [1, 1]} : vector<16x256xf32> to vector<16x128xf32>
    %7 = vector.extract_strided_slice %5 {offsets = [0, 128], sizes = [16, 128], strides = [1, 1]} : vector<16x256xf32> to vector<16x128xf32>
    %cst_5 = arith.constant 0.000000e+00 : f32
    %8 = vector.broadcast %cst_5 : f32 to vector<16x128xf32>
    %9 = arith.cmpf ogt, %6, %8 : vector<16x128xf32>
    %10 = math.exp %6 : vector<16x128xf32>
    %cst_6 = arith.constant 1.000000e+00 : f32
    %11 = vector.broadcast %cst_6 : f32 to vector<16x128xf32>
    %12 = arith.subf %10, %11 : vector<16x128xf32>
    %13 = arith.select %9, %6, %12 : vector<16x128xi1>, vector<16x128xf32>
    %c0_7 = arith.constant 0 : index
    %c0_8 = arith.constant 0 : index
    %14 = vector.load %arg4[%c0_7, %c0_8] : memref<128x128xf32, #tpu.memory_space<vmem>>, vector<128x128xf32>
    %cst_9 = arith.constant dense<0.000000e+00> : vector<16x128xf32>
    %15 = tpu.matmul %13, %14, %cst_9 {dimension_numbers = #tpu.dot_dimension_numbers<[1], [0], [0], [1], [0, 0, 1, 1], [], []>} : vector<16x128xf32>, vector<128x128xf32>, vector<16x128xf32> -> vector<16x128xf32>
    %c0_10 = arith.constant 0 : index
    %c0_11 = arith.constant 0 : index
    %16 = vector.load %arg5[%c0_10, %c0_11] : memref<1x128xf32, #tpu.memory_space<vmem>>, vector<1x128xf32>
    %17 = vector.broadcast %16 : vector<1x128xf32> to vector<16x128xf32>
    %18 = arith.addf %15, %17 : vector<16x128xf32>
    %c0_12 = arith.constant 0 : index
    %c0_13 = arith.constant 0 : index
    %19 = vector.load %arg6[%c0_12, %c0_13] : memref<128x256xf32, #tpu.memory_space<vmem>>, vector<128x256xf32>
    %cst_14 = arith.constant dense<0.000000e+00> : vector<16x256xf32>
    %20 = tpu.matmul %18, %19, %cst_14 {dimension_numbers = #tpu.dot_dimension_numbers<[1], [0], [0], [1], [0, 0, 1, 1], [], []>} : vector<16x128xf32>, vector<128x256xf32>, vector<16x256xf32> -> vector<16x256xf32>
    %c0_15 = arith.constant 0 : index
    %c0_16 = arith.constant 0 : index
    %21 = vector.load %arg7[%c0_15, %c0_16] : memref<1x256xf32, #tpu.memory_space<vmem>>, vector<1x256xf32>
    %22 = vector.broadcast %21 : vector<1x256xf32> to vector<16x256xf32>
    %23 = arith.addf %20, %22 : vector<16x256xf32>
    %24 = vector.extract_strided_slice %23 {offsets = [0, 0], sizes = [16, 128], strides = [1, 1]} : vector<16x256xf32> to vector<16x128xf32>
    %25 = vector.extract_strided_slice %23 {offsets = [0, 128], sizes = [16, 128], strides = [1, 1]} : vector<16x256xf32> to vector<16x128xf32>
    %cst_17 = arith.constant 0.000000e+00 : f32
    %26 = vector.broadcast %cst_17 : f32 to vector<16x128xf32>
    %27 = arith.subf %26, %25 : vector<16x128xf32>
    %28 = math.exp %27 : vector<16x128xf32>
    %cst_18 = arith.constant 1.000000e+00 : f32
    %29 = vector.broadcast %cst_18 : f32 to vector<16x128xf32>
    %30 = arith.addf %29, %28 : vector<16x128xf32>
    %31 = tpu.reciprocal %30 : vector<16x128xf32> -> vector<16x128xf32>
    %32 = arith.mulf %24, %31 : vector<16x128xf32>
    %33 = arith.addf %7, %32 : vector<16x128xf32>
    %cst_19 = arith.constant dense<0.000000e+00> : vector<16xf32>
    %34 = vector.multi_reduction <add>, %33, %cst_19 [1] : vector<16x128xf32> to vector<16xf32>
    %35 = vector.shape_cast %34 : vector<16xf32> to vector<16x1xf32>
    %cst_20 = arith.constant 3.125000e-02 : f32
    %36 = vector.broadcast %cst_20 : f32 to vector<16x1xf32>
    %37 = arith.mulf %35, %36 : vector<16x1xf32>
    %38 = arith.mulf %33, %33 : vector<16x128xf32>
    %cst_21 = arith.constant dense<0.000000e+00> : vector<16xf32>
    %39 = vector.multi_reduction <add>, %38, %cst_21 [1] : vector<16x128xf32> to vector<16xf32>
    %40 = vector.shape_cast %39 : vector<16xf32> to vector<16x1xf32>
    %cst_22 = arith.constant 3.125000e-02 : f32
    %41 = vector.broadcast %cst_22 : f32 to vector<16x1xf32>
    %42 = arith.mulf %40, %41 : vector<16x1xf32>
    %43 = arith.mulf %37, %37 : vector<16x1xf32>
    %44 = arith.subf %42, %43 : vector<16x1xf32>
    %cst_23 = arith.constant 0.000000e+00 : f32
    %45 = vector.broadcast %cst_23 : f32 to vector<16x1xf32>
    %46 = arith.maximumf %44, %45 : vector<16x1xf32>
    %47 = vector.broadcast %37 : vector<16x1xf32> to vector<16x128xf32>
    %48 = arith.subf %33, %47 : vector<16x128xf32>
    %cst_24 = arith.constant 9.99999974E-6 : f32
    %49 = vector.broadcast %cst_24 : f32 to vector<16x1xf32>
    %50 = arith.addf %46, %49 : vector<16x1xf32>
    %51 = math.rsqrt %50 : vector<16x1xf32>
    %52 = vector.broadcast %51 : vector<16x1xf32> to vector<16x128xf32>
    %53 = arith.mulf %48, %52 : vector<16x128xf32>
    %c0_25 = arith.constant 0 : index
    %c0_26 = arith.constant 0 : index
    %54 = vector.load %arg8[%c0_25, %c0_26] : memref<1x128xf32, #tpu.memory_space<vmem>>, vector<1x128xf32>
    %55 = vector.broadcast %54 : vector<1x128xf32> to vector<16x128xf32>
    %56 = arith.mulf %53, %55 : vector<16x128xf32>
    %c0_27 = arith.constant 0 : index
    %c0_28 = arith.constant 0 : index
    %57 = vector.load %arg9[%c0_27, %c0_28] : memref<1x128xf32, #tpu.memory_space<vmem>>, vector<1x128xf32>
    %58 = vector.broadcast %57 : vector<1x128xf32> to vector<16x128xf32>
    %59 = arith.addf %56, %58 : vector<16x128xf32>
    %60 = vector.extract_strided_slice %59 {offsets = [0, 0], sizes = [16, 32], strides = [1, 1]} : vector<16x128xf32> to vector<16x32xf32>
    %c0_29 = arith.constant 0 : index
    %c0_30 = arith.constant 0 : index
    %61 = vector.load %arg10[%c0_29, %c0_30] : memref<16x32xf32, #tpu.memory_space<vmem>>, vector<16x32xf32>
    tpu.vector_store %arg10[%c0_29, %c0_30], %60 {strides = array<i32>} : memref<16x32xf32, #tpu.memory_space<vmem>>, vector<16x32xf32>,
    return
  }
  func.func @transform_0(%arg0: i32) -> (i32, i32) {
    %c0_i32 = arith.constant 0 : i32
    %c0_i32_0 = arith.constant 0 : i32
    return %arg0, %c0_i32 : i32, i32
  }
  func.func @transform_1(%arg0: i32) -> (i32, i32) {
    %c0_i32 = arith.constant 0 : i32
    %c0_i32_0 = arith.constant 0 : i32
    %c0_i32_1 = arith.constant 0 : i32
    return %c0_i32, %c0_i32_0 : i32, i32
  }
  func.func @transform_2(%arg0: i32) -> (i32, i32) {
    %c0_i32 = arith.constant 0 : i32
    %c0_i32_0 = arith.constant 0 : i32
    %c0_i32_1 = arith.constant 0 : i32
    return %c0_i32, %c0_i32_0 : i32, i32
  }
  func.func @transform_3(%arg0: i32) -> (i32, i32) {
    %c0_i32 = arith.constant 0 : i32
    %c0_i32_0 = arith.constant 0 : i32
    %c0_i32_1 = arith.constant 0 : i32
    return %c0_i32, %c0_i32_0 : i32, i32
  }
  func.func @transform_4(%arg0: i32) -> (i32, i32) {
    %c0_i32 = arith.constant 0 : i32
    %c0_i32_0 = arith.constant 0 : i32
    %c0_i32_1 = arith.constant 0 : i32
    return %c0_i32, %c0_i32_0 : i32, i32
  }
  func.func @transform_5(%arg0: i32) -> (i32, i32) {
    %c0_i32 = arith.constant 0 : i32
    %c0_i32_0 = arith.constant 0 : i32
    %c0_i32_1 = arith.constant 0 : i32
    return %c0_i32, %c0_i32_0 : i32, i32
  }
  func.func @transform_6(%arg0: i32) -> (i32, i32) {
    %c0_i32 = arith.constant 0 : i32
    %c0_i32_0 = arith.constant 0 : i32
    %c0_i32_1 = arith.constant 0 : i32
    return %c0_i32, %c0_i32_0 : i32, i32
  }
  func.func @transform_7(%arg0: i32) -> (i32, i32) {
    %c0_i32 = arith.constant 0 : i32
    %c0_i32_0 = arith.constant 0 : i32
    %c0_i32_1 = arith.constant 0 : i32
    return %c0_i32, %c0_i32_0 : i32, i32
  }
  func.func @transform_8(%arg0: i32) -> (i32, i32) {
    %c0_i32 = arith.constant 0 : i32
    %c0_i32_0 = arith.constant 0 : i32
    %c0_i32_1 = arith.constant 0 : i32
    return %c0_i32, %c0_i32_0 : i32, i32
  }
  func.func @transform_9(%arg0: i32) -> (i32, i32) {
    %c0_i32 = arith.constant 0 : i32
    %c0_i32_0 = arith.constant 0 : i32
    return %arg0, %c0_i32 : i32, i32
  }
}

</mosaic_0001>

<bundles_post_ra>
// kernel: tpu_custom_call.1
= control target key start
LH: loop header
LB: loop body
LE: loop exit
PB: predicated region body
PF: predicated region fallthrough
CT: control target
= control target key end

     0   :  { %14 = vsyncpa [#allocation3], 0  ;;  %s1195_s0 = inlined_call_operand.vmem [shape: f32[64,16], index: 0, kind: input, shape index: {}]   ;;  %s1196_s1 = inlined_call_operand.vmem [shape: f32[16,256], index: 1, kind: input, shape index: {}]   ;;  %s1197_s2 = inlined_call_operand.vmem [shape: f32[1,256], index: 2, kind: input, shape index: {}]   ;;  %s1198_s3 = inlined_call_operand.hbm [shape: f32[128,128], index: 3, kind: input, shape index: {}]   ;;  %s1199_s4 = inlined_call_operand.vmem [shape: f32[1,128], index: 4, kind: input, shape index: {}]   ;;  %s1200_s5 = inlined_call_operand.hbm [shape: f32[128,256], index: 5, kind: input, shape index: {}]   ;;  %s1201_s6 = inlined_call_operand.vmem [shape: f32[1,256], index: 6, kind: input, shape index: {}]   ;;  %s1202_s7 = inlined_call_operand.vmem [shape: f32[1,128], index: 7, kind: input, shape index: {}]   ;;  %s1203_s8 = inlined_call_operand.vmem [shape: f32[1,128], index: 8, kind: input, shape index: {}]   ;;  %s1204_s9 = inlined_call_operand.vmem [shape: f32[64,32], index: 9, kind: output, shape index: {}]  }
   0x1   :  { %15 = vsyncpa [#allocation5], 0  ;;  %s1088_s30 = smov 0  }
   0x2 LB: > { %s1031_s10 = smov [#allocation2]   ;;  %s838_s12 = sadd.s32 4294967295, %s1029_s30   ;;  %s1029_s30 = sphi %s1088_s30, %s21_s30  }
   0x3   : > { %s264_s11 = sshll.u32 %s1031_s10, 4  ;;  %p840_p0 = scmp.ge.s32.totalorder %s1029_s30, 1  ;;  %s265_s11 = int_to_ptr.vmem [resolvable:$true] %s264_s11 }
   0x4   : > { %p246_p1 = scmp.lt.s32.totalorder %s1029_s30, 5  ;;  %p1102_p3 = scmp.eq.s32.totalorder %s838_s12, 0 }
   0x5   : > { %s1032_s15 = smov [#allocation4]   ;;  %s974_s18 = scalar_lea.vmem %s265_s11, 2048 }
   0x6   : > { %p1096_p2 = pnand %p840_p0, %p246_p1  ;;  %s280_s16 = sshll.u32 %s1032_s15, 4  ;;  %s281_s16 = int_to_ptr.vmem [resolvable:$true] %s280_s16 }
   0x7   : > { %p975_p7 = scmp.ne.s32.totalorder %s265_s11, %s974_s18  ;;  %p982_p10 = scmp.lt.s32.totalorder %s265_s11, %s265_s11 }
   0x8   : > { %p921_p4 = pneg %p1096_p2  ;;  %p983_p11 = scmp.lt.s32.totalorder %s974_s18, %s974_s18 }
   0xa   : > { %p1110_p5 = pnand %p1102_p3, %p921_p4  ;;  %p984_p12 = por %p983_p11, %p982_p10 }
   0xc   : > { %p965_p6 = pneg %p1110_p5 }
   0xe   : > { %p977_p8 = pnand %p975_p7, %p965_p6 }
  0x10   : > { %p978_p9 = pneg %p977_p8 }
  0x12   : > { %p985_p13 = pnand %p984_p12, %p978_p9 }
  0x14   : > { %988 = shalt.err (!%p985_p13)
}
  0x15   : > { %s1033_s19 = smov 128   ;;  %s1034_s20 = smov 8  }
  0x16   : > { %924 = dma.hbm_to_vmem [thread:$0]  (!%p1110_p5), %s1198_s3, 2048, %s265_s11, [#allocation3], %s1033_s19, %s1033_s19, %s1034_s20  }
  0x17   : > { %s1000_s23 = scalar_lea.vmem %s281_s16, 4096  ;;  %p1008_p7 = scmp.lt.s32.totalorder %s281_s16, %s281_s16 }
  0x18   : > { %p1001_p0 = scmp.ne.s32.totalorder %s281_s16, %s1000_s23  ;;  %p1009_p8 = scmp.lt.s32.totalorder %s1000_s23, %s1000_s23 }
  0x1a   : > { %p1003_p1 = pnand %p1001_p0, %p965_p6  ;;  %p1010_p10 = por %p1009_p8, %p1008_p7 }
  0x1c   : > { %p1004_p4 = pneg %p1003_p1 }
  0x1e   : > { %p1011_p9 = pnand %p1010_p10, %p1004_p4 }
  0x20   : > { %1014 = shalt.err (!%p1011_p9)
}
  0x21   : > { %s1035_s24 = smov 256   ;;  %s1036_s25 = smov 16  }
  0x22   : > { %927 = dma.hbm_to_vmem [thread:$0]  (!%p1110_p5), %s1200_s5, 4096, %s281_s16, [#allocation5], %s1035_s24, %s1035_s24, %s1036_s25  }
  0x23   : > { %314 = sbr.rel (%p1096_p2) target bundleno = 873 (0x369), region = 56 }
  0x28   : > { %1020 = dma.done.wait (%p1102_p3), [#allocation3], 2048  }
  0x29   : > { %1022 = vsyncadd (%p1102_p3), [#allocation3], 4294965248 }
  0x2a   : > { %1024 = dma.done.wait (%p1102_p3), [#allocation5], 4096  }
  0x2b   : > { %1026 = vsyncadd (%p1102_p3), [#allocation5], 4294963200  ;;  %s847_s28 = sshll.u32 %s838_s12, 1  ;;  %v1037_v0 = vmov 0.0   ;;  %v371_v1 = vld [vmem:[%s1196_s1 + $0x18] sm:$0xff]  ;;  %v370_v2 = vld [vmem:[%s1196_s1 + $0x10] sm:$0xff]  ;;  %v374_v50 = vlaneseq }
  0x2c   : > { %455 = vmatprep.mubr.f32.mxu1 %v1037_v0  ;;  %p355_p5 = scmp.lt.s32.totalorder %s847_s28, 7  ;;  %684 = vmatprep.mubr.f32.mxu0 %v1037_v0  ;;  %v369_v3 = vld [vmem:[%s1196_s1 + $0x8] sm:$0xff]  ;;  %v368_v4 = vld [vmem:[%s1196_s1] sm:$0xff]  ;;  %vm384_vm0 = vcmask 130048   ;;  %v493_v6 = vld [vmem:[#allocation2 + $0x78] sm:$0xff]  ;;  %vm757_vm3 = vcmask 261120  }
  0x2d   : > { %419 = vmatprep.subr.mxu1 %v371_v1  ;;  %v492_v7 = vld [vmem:[#allocation2 + $0x70] sm:$0xff]  ;;  %v491_v9 = vld [vmem:[#allocation2 + $0x68] sm:$0xff]  ;;  %v490_v10 = vld [vmem:[#allocation2 + $0x60] sm:$0xff]  ;;  %v1167_v51 = vshrl.u32 %v374_v50, 7 }
  0x2e   : > { %s1209_s28 = smov (!%p355_p5, %s847_s28), 7  ;;  %420 = vmatpush1.msra.mxu1 %v370_v2  ;;  %v489_v11 = vld [vmem:[#allocation2 + $0x58] sm:$0xff]  ;;  %v488_v12 = vld [vmem:[#allocation2 + $0x50] sm:$0xff]  ;;  %v487_v13 = vld [vmem:[#allocation2 + $0x48] sm:$0xff] }
  0x2f   : > { %s848_s29 = sshll.u32 %s1209_s28, 3  ;;  %421 = vmatprep.subr.mxu1 %v369_v3  ;;  %v486_v14 = vld [vmem:[#allocation2 + $0x40] sm:$0xff]  ;;  %v485_v15 = vld [vmem:[#allocation2 + $0x38] sm:$0xff]  ;;  %v484_v16 = vld [vmem:[#allocation2 + $0x30] sm:$0xff]  ;;  %v376_v52 = vsub.s32 0, %v1167_v51 }
  0x30   : > { %s358_s13 = scalar_lea.vmem %s1195_s0, %s848_s29  ;;  %422 = vmatpush1.msra.mxu1 %v368_v4  ;;  %v483_v17 = vld [vmem:[#allocation2 + $0x28] sm:$0xff]  ;;  %v482_v18 = vld [vmem:[#allocation2 + $0x20] sm:$0xff]  ;;  %v481_v19 = vld [vmem:[#allocation2 + $0x18] sm:$0xff]  ;;  %s364_s12 = scalar_lea.vmem %s1204_s9, %s848_s29 }
  0x31   : > { %v366_v5 = vld [vmem:[%s358_s13] sm:$0xff]  ;;  %878 = vmatprep.subr.mxu1 %v493_v6  ;;  %v367_v8 = vld [vmem:[%s358_s13 + $0x8] sm:$0xff]  ;;  %v480_v20 = vld [vmem:[#allocation2 + $0x10] sm:$0xff] }
  0x32   : > { %851 = vmatmul.mubr.msk.f32.vlgmr.msra.gmra.mxu1 %vm384_vm0, %v366_v5  ;;  %v479_v21 = vld [vmem:[#allocation2 + $0x8] sm:$0xff]  ;;  %v478_v22 = vld [vmem:[#allocation2] sm:$0xff]  ;;  %v607_v23 = vld [vmem:[#allocation4 + $0xf8] sm:$0xff] }
  0x33   : > { %461 = vmatprep.mubr.f32.mxu1 %v1037_v0  ;;  %879 = vmatpush3.msra.mxu1 %v493_v6  ;;  %v606_v24 = vld [vmem:[#allocation4 + $0xf0] sm:$0xff]  ;;  %v605_v25 = vld [vmem:[#allocation4 + $0xe8] sm:$0xff]  ;;  %v604_v26 = vld [vmem:[#allocation4 + $0xe0] sm:$0xff] }
  0x34   : > { %880 = vmatprep.subr.mxu1 %v492_v7  ;;  %620 = vmatprep.subr.mxu0 %v607_v23  ;;  %v603_v27 = vld [vmem:[#allocation4 + $0xd8] sm:$0xff]  ;;  %v602_v28 = vld [vmem:[#allocation4 + $0xd0] sm:$0xff]  ;;  %v601_v29 = vld [vmem:[#allocation4 + $0xc8] sm:$0xff] }
  0x35   : > { %881 = vmatpush3.msra.mxu1 %v492_v7  ;;  %621 = vmatpush1.msra.mxu0 %v606_v24  ;;  %v600_v30 = vld [vmem:[#allocation4 + $0xc0] sm:$0xff]  ;;  %v599_v31 = vld [vmem:[#allocation4 + $0xb8] sm:$0xff]  ;;  %v598_v32 = vld [vmem:[#allocation4 + $0xb0] sm:$0xff] }
  0x36   : > { %852 = vmatmul.mubr.msk.f32.gmra.mxu1 %vm384_vm0, %v367_v8  ;;  %882 = vmatprep.subr.mxu1 %v491_v9  ;;  %v597_v33 = vld [vmem:[#allocation4 + $0xa8] sm:$0xff]  ;;  %v596_v34 = vld [vmem:[#allocation4 + $0xa0] sm:$0xff]  ;;  %v595_v35 = vld [vmem:[#allocation4 + $0x98] sm:$0xff] }
  0x37   : > { %883 = vmatpush3.msra.mxu1 %v491_v9  ;;  %622 = vmatprep.subr.mxu0 %v605_v25  ;;  %v594_v36 = vld [vmem:[#allocation4 + $0x90] sm:$0xff]  ;;  %v593_v37 = vld [vmem:[#allocation4 + $0x88] sm:$0xff]  ;;  %v592_v38 = vld [vmem:[#allocation4 + $0x80] sm:$0xff] }
  0x38   : > { %884 = vmatprep.subr.mxu1 %v490_v10  ;;  %623 = vmatpush1.msra.mxu0 %v604_v26  ;;  %v591_v39 = vld [vmem:[#allocation4 + $0x78] sm:$0xff]  ;;  %v590_v40 = vld [vmem:[#allocation4 + $0x70] sm:$0xff]  ;;  %v589_v41 = vld [vmem:[#allocation4 + $0x68] sm:$0xff] }
  0x39   : > { %885 = vmatpush3.msra.mxu1 %v490_v10  ;;  %624 = vmatprep.subr.mxu0 %v603_v27  ;;  %v588_v42 = vld [vmem:[#allocation4 + $0x60] sm:$0xff]  ;;  %v587_v43 = vld [vmem:[#allocation4 + $0x58] sm:$0xff]  ;;  %v586_v44 = vld [vmem:[#allocation4 + $0x50] sm:$0xff] }
  0x3a   : > { %886 = vmatprep.subr.mxu1 %v489_v11  ;;  %625 = vmatpush1.msra.mxu0 %v602_v28  ;;  %v585_v45 = vld [vmem:[#allocation4 + $0x48] sm:$0xff]  ;;  %v584_v46 = vld [vmem:[#allocation4 + $0x40] sm:$0xff]  ;;  %v583_v47 = vld [vmem:[#allocation4 + $0x38] sm:$0xff] }
  0x3b   : > { %887 = vmatpush3.msra.mxu1 %v489_v11  ;;  %626 = vmatprep.subr.mxu0 %v601_v29  ;;  %v582_v48 = vld [vmem:[#allocation4 + $0x30] sm:$0xff]  ;;  %v581_v49 = vld [vmem:[#allocation4 + $0x28] sm:$0xff]  ;;  %v372_v53 = vld [vmem:[%s1197_s2] sm:$0x3] }
  0x3c   : > { %888 = vmatprep.subr.mxu1 %v488_v12  ;;  %627 = vmatpush1.msra.mxu0 %v600_v30  ;;  %v377_v54 = vrot.slane %v372_v53, %v376_v52  ;;  %v580_v5 = vld [vmem:[#allocation4 + $0x20] sm:$0xff]  ;;  %v579_v6 = vld [vmem:[#allocation4 + $0x18] sm:$0xff]  ;;  %v578_v7 = vld [vmem:[#allocation4 + $0x10] sm:$0xff] }
  0x3d   : > { %889 = vmatpush3.msra.mxu1 %v488_v12  ;;  %628 = vmatprep.subr.mxu0 %v599_v31  ;;  %v577_v8 = vld [vmem:[#allocation4 + $0x8] sm:$0xff]  ;;  %v576_v9 = vld [vmem:[#allocation4] sm:$0xff] }
  0x3e   : > { %890 = vmatprep.subr.mxu1 %v487_v13  ;;  %629 = vmatpush1.msra.mxu0 %v598_v32  ;;  %v855_v12 = vld [vmem:[%s1199_s4] ss:$0 sm:$0xff] }
  0x3f   : > { %891 = vmatpush3.msra.mxu1 %v487_v13  ;;  %630 = vmatprep.subr.mxu0 %v597_v33 }
  0x40   : > { %892 = vmatprep.subr.mxu1 %v486_v14  ;;  %631 = vmatpush1.msra.mxu0 %v596_v34 }
  0x41   : > { %893 = vmatpush3.msra.mxu1 %v486_v14  ;;  %632 = vmatprep.subr.mxu0 %v595_v35 }
  0x42   : > { %894 = vmatprep.subr.mxu1 %v485_v15  ;;  %633 = vmatpush1.msra.mxu0 %v594_v36 }
  0x43   : > { %895 = vmatpush3.msra.mxu1 %v485_v15  ;;  %634 = vmatprep.subr.mxu0 %v593_v37 }
  0x44   : > { %896 = vmatprep.subr.mxu1 %v484_v16  ;;  %635 = vmatpush1.msra.mxu0 %v592_v38 }
  0x45   : > { %897 = vmatpush3.msra.mxu1 %v484_v16  ;;  %636 = vmatprep.subr.mxu0 %v591_v39  ;;  %v380_v16 = vsub.s32 1, %v1167_v51 }
  0x46   : > { %898 = vmatprep.subr.mxu1 %v483_v17  ;;  %637 = vmatpush1.msra.mxu0 %v590_v40 }
  0x47   : > { %899 = vmatpush3.msra.mxu1 %v483_v17  ;;  %638 = vmatprep.subr.mxu0 %v589_v41  ;;  %v608_v17 = vld [vmem:[%s1201_s6] sm:$0x3]  ;;  %v381_v33 = vrot.slane %v372_v53, %v380_v16 }
  0x48   : > { %900 = vmatprep.subr.mxu1 %v482_v18  ;;  %639 = vmatpush1.msra.mxu0 %v588_v42  ;;  %v613_v32 = vrot.slane %v608_v17, %v376_v52 }
  0x49   : > { %901 = vmatpush3.msra.mxu1 %v482_v18  ;;  %640 = vmatprep.subr.mxu0 %v587_v43  ;;  %v617_v18 = vrot.slane %v608_v17, %v380_v16 }
  0x4a   : > { %902 = vmatprep.subr.mxu1 %v481_v19  ;;  %641 = vmatpush1.msra.mxu0 %v586_v44 }
  0x4b   : > { %903 = vmatpush3.msra.mxu1 %v481_v19  ;;  %642 = vmatprep.subr.mxu0 %v585_v45 }
  0x4c   : > { %904 = vmatprep.subr.mxu1 %v480_v20  ;;  %643 = vmatpush1.msra.mxu0 %v584_v46 }
  0x4d   : > { %905 = vmatpush3.msra.mxu1 %v480_v20  ;;  %644 = vmatprep.subr.mxu0 %v583_v47 }
  0x4e   : > { %906 = vmatprep.subr.mxu1 %v479_v21  ;;  %645 = vmatpush1.msra.mxu0 %v582_v48 }
  0x4f   : > { %907 = vmatpush3.msra.mxu1 %v479_v21  ;;  %646 = vmatprep.subr.mxu0 %v581_v49 }
  0x50   : > { %908 = vmatprep.subr.mxu1 %v478_v22  ;;  %647 = vmatpush1.msra.mxu0 %v580_v5 }
  0x51   : > { %909 = vmatpush3.msra.mxu1 %v478_v22  ;;  %648 = vmatprep.subr.mxu0 %v579_v6 }
  0x52   : > { %649 = vmatpush1.msra.mxu0 %v578_v7 }
  0x53   : > { %650 = vmatprep.subr.mxu0 %v577_v8 }
  0x54   : > { %651 = vmatpush1.msra.mxu0 %v576_v9 }
  0xf2   : > { %v457_v55 = vpop.f32.mrf.mxu1 }
  0xf3   : > { %v458_v56 = vadd.f32 %v457_v55, %v377_v54 }
  0xf4   : > { %v459_v57 = vpop.f32.mrf.mxu1 }
  0xf5   : > { %v470_v58 = vmul.f32 1.442695, %v458_v56  ;;  %vm468_vm1 = vcmp.gt.f32.partialorder %v458_v56, 0.0  ;;  %v460_v36 = vadd.f32 %v459_v57, %v381_v33 }
  0xf6   : > { %v463_v59 = vpop.f32.mrf.mxu1 }
  0xf7   : > { %947 = vpow2.f32 %v470_v58  ;;  %v464_v60 = vadd.f32 %v463_v59, %v377_v54 }
  0xf8   : > { %v465_v10 = vpop.f32.mrf.mxu1 }
  0xf9   : > { %v472_v61 = vmul.f32 1.442695, %v464_v60  ;;  %vm469_vm2 = vcmp.gt.f32.partialorder %v464_v60, 0.0  ;;  %v466_v41 = vadd.f32 %v465_v10, %v381_v33 }
  0xfb   : > { %949 = vpow2.f32 %v472_v61 }
 0x104   : > { %v948_v62 = vpop.eup %947 }
 0x105   : > { %v853_v63 = vadd.f32 -1.0, %v948_v62 }
 0x107   : > { %v476_v1 = vsel %vm468_vm1, %v458_v56, %v853_v63 }
 0x108   : > { %v950_v2 = vpop.eup %949  ;;  %910 = vmatprep.mubr.f32.mxu1 %v476_v1  ;;  %v856_v1 = vld [vmem:[%s1202_s7] ss:$0 sm:$0xff] }
 0x109   : > { %v854_v3 = vadd.f32 -1.0, %v950_v2 }
 0x10b   : > { %v477_v4 = vsel %vm469_vm2, %v464_v60, %v854_v3  ;;  %v857_v3 = vld [vmem:[%s1203_s8] ss:$0 sm:$0xff] }
 0x10c   : > { %911 = vmatmul.mubr.f32.vlgmr.msra.gmra.mxu1 %v477_v4 }
 0x1cc   : > { %v912_v11 = vpop.f32.mrf.mxu1 }
 0x1cd   : > { %v573_v15 = vadd.f32 %v912_v11, %v855_v12 }
 0x1ce   : > { %v567_v13 = vpop.f32.mrf.mxu1 }
 0x1cf   : > { %v568_v14 = vadd.f32 %v855_v12, %v567_v13 }
 0x1d1   : > { %685 = vmatmul.mubr.f32.vlgmr.msra.gmra.mxu0 %v568_v14 }
 0x1d2   : > { %690 = vmatprep.mubr.f32.mxu0 %v1037_v0 }
 0x1d5   : > { %691 = vmatmul.mubr.f32.gmra.mxu0 %v573_v15 }
 0x291   : > { %v686_v19 = vpop.f32.mrf.mxu0 }
 0x292   : > { %v687_v34 = vadd.f32 %v686_v19, %v613_v32 }
 0x293   : > { %v688_v20 = vpop.f32.mrf.mxu0 }
 0x294   : > { %v689_v21 = vadd.f32 %v688_v20, %v617_v18 }
 0x295   : > { %v692_v22 = vpop.f32.mrf.mxu0 }
 0x296   : > { %v697_v23 = vsub.f32 0.0, %v689_v21  ;;  %v693_v38 = vadd.f32 %v692_v22, %v613_v32 }
 0x297   : > { %v694_v24 = vpop.f32.mrf.mxu0 }
 0x298   : > { %v699_v25 = vmul.f32 1.442695, %v697_v23  ;;  %v695_v26 = vadd.f32 %v694_v24, %v617_v18 }
 0x29a   : > { %951 = vpow2.f32 %v699_v25  ;;  %v698_v27 = vsub.f32 0.0, %v695_v26 }
 0x29c   : > { %v701_v0 = vmul.f32 1.442695, %v698_v27 }
 0x29e   : > { %953 = vpow2.f32 %v701_v0 }
 0x2a7   : > { %v952_v28 = vpop.eup %951 }
 0x2a8   : > { %v703_v29 = vadd.f32 1.0, %v952_v28 }
 0x2aa   : > { %955 = vrcp.f32 %v703_v29 }
 0x2ab   : > { %v954_v30 = vpop.eup %953 }
 0x2ac   : > { %v704_v31 = vadd.f32 1.0, %v954_v30 }
 0x2ae   : > { %957 = vrcp.f32 %v704_v31 }
 0x2b7   : > { %v956_v35 = vpop.eup %955 }
 0x2b8   : > { %v707_v37 = vmul.f32 %v956_v35, %v687_v34 }
 0x2ba   : > { %v709_v39 = vadd.f32 %v707_v37, %v460_v36 }
 0x2bb   : > { %v958_v40 = vpop.eup %957 }
 0x2bc   : > { %711 = vadd.xlane.f32.xlu0 %v709_v39  ;;  %v717_v42 = vmul.f32 %v709_v39, %v709_v39  ;;  %v708_v43 = vmul.f32 %v958_v40, %v693_v38 }
 0x2be   : > { %719 = vadd.xlane.f32.xlu1 %v717_v42  ;;  %v710_v44 = vadd.f32 %v708_v43, %v466_v41 }
 0x2c0   : > { %713 = vadd.xlane.f32.xlu0 %v710_v44  ;;  %v718_v45 = vmul.f32 %v710_v44, %v710_v44 }
 0x2c2   : > { %721 = vadd.xlane.f32.xlu1 %v718_v45 }
 0x345   : > { %v712_v46 = vpop.xlane.xlu0 %711 }
 0x346   : > { %v715_v47 = vmul.f32 0.03125, %v712_v46 }
 0x347   : > { %v720_v48 = vpop.xlane.xlu1 %719 }
 0x348   : > { %v725_v49 = vmul.f32 %v715_v47, %v715_v47  ;;  %v723_v50 = vmul.f32 0.03125, %v720_v48  ;;  %v731_v62 = vsub.f32 %v709_v39, %v715_v47 }
 0x349   : > { %v714_v51 = vpop.xlane.xlu0 %713 }
 0x34a   : > { %v727_v52 = vsub.f32 %v723_v50, %v725_v49  ;;  %v716_v53 = vmul.f32 0.03125, %v714_v51 }
 0x34b   : > { %v722_v54 = vpop.xlane.xlu1 %721 }
 0x34c   : > { %v729_v55 = vmax.f32 %v727_v52, 0.0  ;;  %v726_v56 = vmul.f32 %v716_v53, %v716_v53  ;;  %v724_v57 = vmul.f32 0.03125, %v722_v54  ;;  %v732_v5 = vsub.f32 %v710_v44, %v716_v53 }
 0x34e   : > { %v733_v58 = vadd.f32 1e-05, %v729_v55  ;;  %v728_v59 = vsub.f32 %v724_v57, %v726_v56 }
 0x350   : > { %959 = vrsqrt.f32 %v733_v58  ;;  %v730_v60 = vmax.f32 %v728_v59, 0.0 }
 0x352   : > { %v734_v61 = vadd.f32 1e-05, %v730_v60 }
 0x354   : > { %961 = vrsqrt.f32 %v734_v61 }
 0x35d   : > { %v960_v63 = vpop.eup %959 }
 0x35e   : > { %v737_v2 = vmul.f32 %v960_v63, %v731_v62 }
 0x360   : > { %v746_v4 = vmul.f32 %v856_v1, %v737_v2 }
 0x361   : > { %v962_v6 = vpop.eup %961 }
 0x362   : > { %v755_v7 = vadd.f32 %v857_v3, %v746_v4  ;;  %v738_v8 = vmul.f32 %v962_v6, %v732_v5 }
 0x364   : > { %758 = vst.msk [vmem:[%s364_s12] sm:$0xff] %vm757_vm3, %v755_v7  ;;  %v747_v9 = vmul.f32 %v856_v1, %v738_v8 }
 0x366   : > { %v756_v10 = vadd.f32 %v857_v3, %v747_v9 }
 0x368   : > { %759 = vst.msk [vmem:[%s364_s12 + $0x8] sm:$0xff] %vm757_vm3, %v756_v10 }
 0x369 PF: > { %s21_s30 = sadd.s32 1, %s1029_s30  }
 0x36a   : > { %p18_p2 = scmp.ge.s32.totalorder %s21_s30, 6  }
 0x36c   :  { %20 = sbr.rel (!%p18_p2) target bundleno = 2 (0x2), region = 95 }
 0x371   :  { %782 = vsyncpa [#allocation3], 1 }
 0x372   :  { %784 = vsyncpa [#allocation3 + $0x1], 1 }
 0x373   :  { %785 = vsyncpa [#allocation5], 1 }

// kernel: tpu_custom_call.1
= control target key start
LH: loop header
LB: loop body
LE: loop exit
PB: predicated region body
PF: predicated region fallthrough
CT: control target
= control target key end

     0   :  { %14 = vsyncpa [#allocation3], 0  ;;  %s1195_s0 = inlined_call_operand.vmem [shape: f32[64,16], index: 0, kind: input, shape index: {}]   ;;  %s1196_s1 = inlined_call_operand.vmem [shape: f32[16,256], index: 1, kind: input, shape index: {}]   ;;  %s1197_s2 = inlined_call_operand.vmem [shape: f32[1,256], index: 2, kind: input, shape index: {}]   ;;  %s1198_s3 = inlined_call_operand.hbm [shape: f32[128,128], index: 3, kind: input, shape index: {}]   ;;  %s1199_s4 = inlined_call_operand.vmem [shape: f32[1,128], index: 4, kind: input, shape index: {}]   ;;  %s1200_s5 = inlined_call_operand.hbm [shape: f32[128,256], index: 5, kind: input, shape index: {}]   ;;  %s1201_s6 = inlined_call_operand.vmem [shape: f32[1,256], index: 6, kind: input, shape index: {}]   ;;  %s1202_s7 = inlined_call_operand.vmem [shape: f32[1,128], index: 7, kind: input, shape index: {}]   ;;  %s1203_s8 = inlined_call_operand.vmem [shape: f32[1,128], index: 8, kind: input, shape index: {}]   ;;  %s1204_s9 = inlined_call_operand.vmem [shape: f32[64,32], index: 9, kind: output, shape index: {}]  }
   0x1   :  { %15 = vsyncpa [#allocation5], 0  ;;  %s1088_s30 = smov 0  }
   0x2 LB: > { %s1031_s10 = smov [#allocation2]   ;;  %s838_s12 = sadd.s32 4294967295, %s1029_s30   ;;  %s1029_s30 = sphi %s1088_s30, %s21_s30  }
   0x3   : > { %s264_s11 = sshll.u32 %s1031_s10, 4  ;;  %p840_p0 = scmp.ge.s32.totalorder %s1029_s30, 1  ;;  %s265_s11 = int_to_ptr.vmem [resolvable:$true] %s264_s11 }
   0x4   : > { %p246_p1 = scmp.lt.s32.totalorder %s1029_s30, 5  ;;  %p1102_p3 = scmp.eq.s32.totalorder %s838_s12, 0 }
   0x5   : > { %s1032_s15 = smov [#allocation4]   ;;  %s974_s18 = scalar_lea.vmem %s265_s11, 2048 }
   0x6   : > { %p1096_p2 = pnand %p840_p0, %p246_p1  ;;  %s280_s16 = sshll.u32 %s1032_s15, 4  ;;  %s281_s16 = int_to_ptr.vmem [resolvable:$true] %s280_s16 }
   0x7   : > { %p975_p7 = scmp.ne.s32.totalorder %s265_s11, %s974_s18  ;;  %p982_p10 = scmp.lt.s32.totalorder %s265_s11, %s265_s11 }
   0x8   : > { %p921_p4 = pneg %p1096_p2  ;;  %p983_p11 = scmp.lt.s32.totalorder %s974_s18, %s974_s18 }
   0xa   : > { %p1110_p5 = pnand %p1102_p3, %p921_p4  ;;  %p984_p12 = por %p983_p11, %p982_p10 }
   0xc   : > { %p965_p6 = pneg %p1110_p5 }
   0xe   : > { %p977_p8 = pnand %p975_p7, %p965_p6 }
  0x10   : > { %p978_p9 = pneg %p977_p8 }
  0x12   : > { %p985_p13 = pnand %p984_p12, %p978_p9 }
  0x14   : > { %988 = shalt.err (!%p985_p13)
}
  0x15   : > { %s1033_s19 = smov 128   ;;  %s1034_s20 = smov 8  }
  0x16   : > { %924 = dma.hbm_to_vmem [thread:$0]  (!%p1110_p5), %s1198_s3, 2048, %s265_s11, [#allocation3], %s1033_s19, %s1033_s19, %s1034_s20  }
  0x17   : > { %s1000_s23 = scalar_lea.vmem %s281_s16, 4096  ;;  %p1008_p7 = scmp.lt.s32.totalorder %s281_s16, %s281_s16 }
  0x18   : > { %p1001_p0 = scmp.ne.s32.totalorder %s281_s16, %s1000_s23  ;;  %p1009_p8 = scmp.lt.s32.totalorder %s1000_s23, %s1000_s23 }
  0x1a   : > { %p1003_p1 = pnand %p1001_p0, %p965_p6  ;;  %p1010_p10 = por %p1009_p8, %p1008_p7 }
  0x1c   : > { %p1004_p4 = pneg %p1003_p1 }
  0x1e   : > { %p1011_p9 = pnand %p1010_p10, %p1004_p4 }
  0x20   : > { %1014 = shalt.err (!%p1011_p9)
}
  0x21   : > { %s1035_s24 = smov 256   ;;  %s1036_s25 = smov 16  }
  0x22   : > { %927 = dma.hbm_to_vmem [thread:$0]  (!%p1110_p5), %s1200_s5, 4096, %s281_s16, [#allocation5], %s1035_s24, %s1035_s24, %s1036_s25  }
  0x23   : > { %314 = sbr.rel (%p1096_p2) target bundleno = 873 (0x369), region = 56 }
  0x28   : > { %1020 = dma.done.wait (%p1102_p3), [#allocation3], 2048  }
  0x29   : > { %1022 = vsyncadd (%p1102_p3), [#allocation3], 4294965248 }
  0x2a   : > { %1024 = dma.done.wait (%p1102_p3), [#allocation5], 4096  }
  0x2b   : > { %1026 = vsyncadd (%p1102_p3), [#allocation5], 4294963200  ;;  %s847_s28 = sshll.u32 %s838_s12, 1  ;;  %v1037_v0 = vmov 0.0   ;;  %v371_v1 = vld [vmem:[%s1196_s1 + $0x18] sm:$0xff]  ;;  %v370_v2 = vld [vmem:[%s1196_s1 + $0x10] sm:$0xff]  ;;  %v374_v50 = vlaneseq }
  0x2c   : > { %455 = vmatprep.mubr.f32.mxu1 %v1037_v0  ;;  %p355_p5 = scmp.lt.s32.totalorder %s847_s28, 7  ;;  %684 = vmatprep.mubr.f32.mxu0 %v1037_v0  ;;  %v369_v3 = vld [vmem:[%s1196_s1 + $0x8] sm:$0xff]  ;;  %v368_v4 = vld [vmem:[%s1196_s1] sm:$0xff]  ;;  %vm384_vm0 = vcmask 130048   ;;  %v493_v6 = vld [vmem:[#allocation2 + $0x78] sm:$0xff]  ;;  %vm757_vm3 = vcmask 261120  }
  0x2d   : > { %419 = vmatprep.subr.mxu1 %v371_v1  ;;  %v492_v7 = vld [vmem:[#allocation2 + $0x70] sm:$0xff]  ;;  %v491_v9 = vld [vmem:[#allocation2 + $0x68] sm:$0xff]  ;;  %v490_v10 = vld [vmem:[#allocation2 + $0x60] sm:$0xff]  ;;  %v1167_v51 = vshrl.u32 %v374_v50, 7 }
  0x2e   : > { %s1209_s28 = smov (!%p355_p5, %s847_s28), 7  ;;  %420 = vmatpush1.msra.mxu1 %v370_v2  ;;  %v489_v11 = vld [vmem:[#allocation2 + $0x58] sm:$0xff]  ;;  %v488_v12 = vld [vmem:[#allocation2 + $0x50] sm:$0xff]  ;;  %v487_v13 = vld [vmem:[#allocation2 + $0x48] sm:$0xff] }
  0x2f   : > { %s848_s29 = sshll.u32 %s1209_s28, 3  ;;  %421 = vmatprep.subr.mxu1 %v369_v3  ;;  %v486_v14 = vld [vmem:[#allocation2 + $0x40] sm:$0xff]  ;;  %v485_v15 = vld [vmem:[#allocation2 + $0x38] sm:$0xff]  ;;  %v484_v16 = vld [vmem:[#allocation2 + $0x30] sm:$0xff]  ;;  %v376_v52 = vsub.s32 0, %v1167_v51 }
  0x30   : > { %s358_s13 = scalar_lea.vmem %s1195_s0, %s848_s29  ;;  %422 = vmatpush1.msra.mxu1 %v368_v4  ;;  %v483_v17 = vld [vmem:[#allocation2 + $0x28] sm:$0xff]  ;;  %v482_v18 = vld [vmem:[#allocation2 + $0x20] sm:$0xff]  ;;  %v481_v19 = vld [vmem:[#allocation2 + $0x18] sm:$0xff]  ;;  %s364_s12 = scalar_lea.vmem %s1204_s9, %s848_s29 }
  0x31   : > { %v366_v5 = vld [vmem:[%s358_s13] sm:$0xff]  ;;  %878 = vmatprep.subr.mxu1 %v493_v6  ;;  %v367_v8 = vld [vmem:[%s358_s13 + $0x8] sm:$0xff]  ;;  %v480_v20 = vld [vmem:[#allocation2 + $0x10] sm:$0xff] }
  0x32   : > { %851 = vmatmul.mubr.msk.f32.vlgmr.msra.gmra.mxu1 %vm384_vm0, %v366_v5  ;;  %v479_v21 = vld [vmem:[#allocation2 + $0x8] sm:$0xff]  ;;  %v478_v22 = vld [vmem:[#allocation2] sm:$0xff]  ;;  %v607_v23 = vld [vmem:[#allocation4 + $0xf8] sm:$0xff] }
  0x33   : > { %461 = vmatprep.mubr.f32.mxu1 %v1037_v0  ;;  %879 = vmatpush3.msra.mxu1 %v493_v6  ;;  %v606_v24 = vld [vmem:[#allocation4 + $0xf0] sm:$0xff]  ;;  %v605_v25 = vld [vmem:[#allocation4 + $0xe8] sm:$0xff]  ;;  %v604_v26 = vld [vmem:[#allocation4 + $0xe0] sm:$0xff] }
  0x34   : > { %880 = vmatprep.subr.mxu1 %v492_v7  ;;  %620 = vmatprep.subr.mxu0 %v607_v23  ;;  %v603_v27 = vld [vmem:[#allocation4 + $0xd8] sm:$0xff]  ;;  %v602_v28 = vld [vmem:[#allocation4 + $0xd0] sm:$0xff]  ;;  %v601_v29 = vld [vmem:[#allocation4 + $0xc8] sm:$0xff] }
  0x35   : > { %881 = vmatpush3.msra.mxu1 %v492_v7  ;;  %621 = vmatpush1.msra.mxu0 %v606_v24  ;;  %v600_v30 = vld [vmem:[#allocation4 + $0xc0] sm:$0xff]  ;;  %v599_v31 = vld [vmem:[#allocation4 + $0xb8] sm:$0xff]  ;;  %v598_v32 = vld [vmem:[#allocation4 + $0xb0] sm:$0xff] }
  0x36   : > { %852 = vmatmul.mubr.msk.f32.gmra.mxu1 %vm384_vm0, %v367_v8  ;;  %882 = vmatprep.subr.mxu1 %v491_v9  ;;  %v597_v33 = vld [vmem:[#allocation4 + $0xa8] sm:$0xff]  ;;  %v596_v34 = vld [vmem:[#allocation4 + $0xa0] sm:$0xff]  ;;  %v595_v35 = vld [vmem:[#allocation4 + $0x98] sm:$0xff] }
  0x37   : > { %883 = vmatpush3.msra.mxu1 %v491_v9  ;;  %622 = vmatprep.subr.mxu0 %v605_v25  ;;  %v594_v36 = vld [vmem:[#allocation4 + $0x90] sm:$0xff]  ;;  %v593_v37 = vld [vmem:[#allocation4 + $0x88] sm:$0xff]  ;;  %v592_v38 = vld [vmem:[#allocation4 + $0x80] sm:$0xff] }
  0x38   : > { %884 = vmatprep.subr.mxu1 %v490_v10  ;;  %623 = vmatpush1.msra.mxu0 %v604_v26  ;;  %v591_v39 = vld [vmem:[#allocation4 + $0x78] sm:$0xff]  ;;  %v590_v40 = vld [vmem:[#allocation4 + $0x70] sm:$0xff]  ;;  %v589_v41 = vld [vmem:[#allocation4 + $0x68] sm:$0xff] }
  0x39   : > { %885 = vmatpush3.msra.mxu1 %v490_v10  ;;  %624 = vmatprep.subr.mxu0 %v603_v27  ;;  %v588_v42 = vld [vmem:[#allocation4 + $0x60] sm:$0xff]  ;;  %v587_v43 = vld [vmem:[#allocation4 + $0x58] sm:$0xff]  ;;  %v586_v44 = vld [vmem:[#allocation4 + $0x50] sm:$0xff] }
  0x3a   : > { %886 = vmatprep.subr.mxu1 %v489_v11  ;;  %625 = vmatpush1.msra.mxu0 %v602_v28  ;;  %v585_v45 = vld [vmem:[#allocation4 + $0x48] sm:$0xff]  ;;  %v584_v46 = vld [vmem:[#allocation4 + $0x40] sm:$0xff]  ;;  %v583_v47 = vld [vmem:[#allocation4 + $0x38] sm:$0xff] }
  0x3b   : > { %887 = vmatpush3.msra.mxu1 %v489_v11  ;;  %626 = vmatprep.subr.mxu0 %v601_v29  ;;  %v582_v48 = vld [vmem:[#allocation4 + $0x30] sm:$0xff]  ;;  %v581_v49 = vld [vmem:[#allocation4 + $0x28] sm:$0xff]  ;;  %v372_v53 = vld [vmem:[%s1197_s2] sm:$0x3] }
  0x3c   : > { %888 = vmatprep.subr.mxu1 %v488_v12  ;;  %627 = vmatpush1.msra.mxu0 %v600_v30  ;;  %v377_v54 = vrot.slane %v372_v53, %v376_v52  ;;  %v580_v5 = vld [vmem:[#allocation4 + $0x20] sm:$0xff]  ;;  %v579_v6 = vld [vmem:[#allocation4 + $0x18] sm:$0xff]  ;;  %v578_v7 = vld [vmem:[#allocation4 + $0x10] sm:$0xff] }
  0x3d   : > { %889 = vmatpush3.msra.mxu1 %v488_v12  ;;  %628 = vmatprep.subr.mxu0 %v599_v31  ;;  %v577_v8 = vld [vmem:[#allocation4 + $0x8] sm:$0xff]  ;;  %v576_v9 = vld [vmem:[#allocation4] sm:$0xff] }
  0x3e   : > { %890 = vmatprep.subr.mxu1 %v487_v13  ;;  %629 = vmatpush1.msra.mxu0 %v598_v32  ;;  %v855_v12 = vld [vmem:[%s1199_s4] ss:$0 sm:$0xff] }
  0x3f   : > { %891 = vmatpush3.msra.mxu1 %v487_v13  ;;  %630 = vmatprep.subr.mxu0 %v597_v33 }
  0x40   : > { %892 = vmatprep.subr.mxu1 %v486_v14  ;;  %631 = vmatpush1.msra.mxu0 %v596_v34 }
  0x41   : > { %893 = vmatpush3.msra.mxu1 %v486_v14  ;;  %632 = vmatprep.subr.mxu0 %v595_v35 }
  0x42   : > { %894 = vmatprep.subr.mxu1 %v485_v15  ;;  %633 = vmatpush1.msra.mxu0 %v594_v36 }
  0x43   : > { %895 = vmatpush3.msra.mxu1 %v485_v15  ;;  %634 = vmatprep.subr.mxu0 %v593_v37 }
  0x44   : > { %896 = vmatprep.subr.mxu1 %v484_v16  ;;  %635 = vmatpush1.msra.mxu0 %v592_v38 }
  0x45   : > { %897 = vmatpush3.msra.mxu1 %v484_v16  ;;  %636 = vmatprep.subr.mxu0 %v591_v39  ;;  %v380_v16 = vsub.s32 1, %v1167_v51 }
  0x46   : > { %898 = vmatprep.subr.mxu1 %v483_v17  ;;  %637 = vmatpush1.msra.mxu0 %v590_v40 }
  0x47   : > { %899 = vmatpush3.msra.mxu1 %v483_v17  ;;  %638 = vmatprep.subr.mxu0 %v589_v41  ;;  %v608_v17 = vld [vmem:[%s1201_s6] sm:$0x3]  ;;  %v381_v33 = vrot.slane %v372_v53, %v380_v16 }
  0x48   : > { %900 = vmatprep.subr.mxu1 %v482_v18  ;;  %639 = vmatpush1.msra.mxu0 %v588_v42  ;;  %v613_v32 = vrot.slane %v608_v17, %v376_v52 }
  0x49   : > { %901 = vmatpush3.msra.mxu1 %v482_v18  ;;  %640 = vmatprep.subr.mxu0 %v587_v43  ;;  %v617_v18 = vrot.slane %v608_v17, %v380_v16 }
  0x4a   : > { %902 = vmatprep.subr.mxu1 %v481_v19  ;;  %641 = vmatpush1.msra.mxu0 %v586_v44 }
  0x4b   : > { %903 = vmatpush3.msra.mxu1 %v481_v19  ;;  %642 = vmatprep.subr.mxu0 %v585_v45 }
  0x4c   : > { %904 = vmatprep.subr.mxu1 %v480_v20  ;;  %643 = vmatpush1.msra.mxu0 %v584_v46 }
  0x4d   : > { %905 = vmatpush3.msra.mxu1 %v480_v20  ;;  %644 = vmatprep.subr.mxu0 %v583_v47 }
  0x4e   : > { %906 = vmatprep.subr.mxu1 %v479_v21  ;;  %645 = vmatpush1.msra.mxu0 %v582_v48 }
  0x4f   : > { %907 = vmatpush3.msra.mxu1 %v479_v21  ;;  %646 = vmatprep.subr.mxu0 %v581_v49 }
  0x50   : > { %908 = vmatprep.subr.mxu1 %v478_v22  ;;  %647 = vmatpush1.msra.mxu0 %v580_v5 }
  0x51   : > { %909 = vmatpush3.msra.mxu1 %v478_v22  ;;  %648 = vmatprep.subr.mxu0 %v579_v6 }
  0x52   : > { %649 = vmatpush1.msra.mxu0 %v578_v7 }
  0x53   : > { %650 = vmatprep.subr.mxu0 %v577_v8 }
  0x54   : > { %651 = vmatpush1.msra.mxu0 %v576_v9 }
  0xf2   : > { %v457_v55 = vpop.f32.mrf.mxu1 }
  0xf3   : > { %v458_v56 = vadd.f32 %v457_v55, %v377_v54 }
  0xf4   : > { %v459_v57 = vpop.f32.mrf.mxu1 }
  0xf5   : > { %v470_v58 = vmul.f32 1.442695, %v458_v56  ;;  %vm468_vm1 = vcmp.gt.f32.partialorder %v458_v56, 0.0  ;;  %v460_v36 = vadd.f32 %v459_v57, %v381_v33 }
  0xf6   : > { %v463_v59 = vpop.f32.mrf.mxu1 }
  0xf7   : > { %947 = vpow2.f32 %v470_v58  ;;  %v464_v60 = vadd.f32 %v463_v59, %v377_v54 }
  0xf8   : > { %v465_v10 = vpop.f32.mrf.mxu1 }
  0xf9   : > { %v472_v61 = vmul.f32 1.442695, %v464_v60  ;;  %vm469_vm2 = vcmp.gt.f32.partialorder %v464_v60, 0.0  ;;  %v466_v41 = vadd.f32 %v465_v10, %v381_v33 }
  0xfb   : > { %949 = vpow2.f32 %v472_v61 }
 0x104   : > { %v948_v62 = vpop.eup %947 }
 0x105   : > { %v853_v63 = vadd.f32 -1.0, %v948_v62 }
 0x107   : > { %v476_v1 = vsel %vm468_vm1, %v458_v56, %v853_v63 }
 0x108   : > { %v950_v2 = vpop.eup %949  ;;  %910 = vmatprep.mubr.f32.mxu1 %v476_v1  ;;  %v856_v1 = vld [vmem:[%s1202_s7] ss:$0 sm:$0xff] }
 0x109   : > { %v854_v3 = vadd.f32 -1.0, %v950_v2 }
 0x10b   : > { %v477_v4 = vsel %vm469_vm2, %v464_v60, %v854_v3  ;;  %v857_v3 = vld [vmem:[%s1203_s8] ss:$0 sm:$0xff] }
 0x10c   : > { %911 = vmatmul.mubr.f32.vlgmr.msra.gmra.mxu1 %v477_v4 }
 0x1cc   : > { %v912_v11 = vpop.f32.mrf.mxu1 }
 0x1cd   : > { %v573_v15 = vadd.f32 %v912_v11, %v855_v12 }
 0x1ce   : > { %v567_v13 = vpop.f32.mrf.mxu1 }
 0x1cf   : > { %v568_v14 = vadd.f32 %v855_v12, %v567_v13 }
 0x1d1   : > { %685 = vmatmul.mubr.f32.vlgmr.msra.gmra.mxu0 %v568_v14 }
 0x1d2   : > { %690 = vmatprep.mubr.f32.mxu0 %v1037_v0 }
 0x1d5   : > { %691 = vmatmul.mubr.f32.gmra.mxu0 %v573_v15 }
 0x291   : > { %v686_v19 = vpop.f32.mrf.mxu0 }
 0x292   : > { %v687_v34 = vadd.f32 %v686_v19, %v613_v32 }
 0x293   : > { %v688_v20 = vpop.f32.mrf.mxu0 }
 0x294   : > { %v689_v21 = vadd.f32 %v688_v20, %v617_v18 }
 0x295   : > { %v692_v22 = vpop.f32.mrf.mxu0 }
 0x296   : > { %v697_v23 = vsub.f32 0.0, %v689_v21  ;;  %v693_v38 = vadd.f32 %v692_v22, %v613_v32 }
 0x297   : > { %v694_v24 = vpop.f32.mrf.mxu0 }
 0x298   : > { %v699_v25 = vmul.f32 1.442695, %v697_v23  ;;  %v695_v26 = vadd.f32 %v694_v24, %v617_v18 }
 0x29a   : > { %951 = vpow2.f32 %v699_v25  ;;  %v698_v27 = vsub.f32 0.0, %v695_v26 }
 0x29c   : > { %v701_v0 = vmul.f32 1.442695, %v698_v27 }
 0x29e   : > { %953 = vpow2.f32 %v701_v0 }
 0x2a7   : > { %v952_v28 = vpop.eup %951 }
 0x2a8   : > { %v703_v29 = vadd.f32 1.0, %v952_v28 }
 0x2aa   : > { %955 = vrcp.f32 %v703_v29 }
 0x2ab   : > { %v954_v30 = vpop.eup %953 }
 0x2ac   : > { %v704_v31 = vadd.f32 1.0, %v954_v30 }
 0x2ae   : > { %957 = vrcp.f32 %v704_v31 }
 0x2b7   : > { %v956_v35 = vpop.eup %955 }
 0x2b8   : > { %v707_v37 = vmul.f32 %v956_v35, %v687_v34 }
 0x2ba   : > { %v709_v39 = vadd.f32 %v707_v37, %v460_v36 }
 0x2bb   : > { %v958_v40 = vpop.eup %957 }
 0x2bc   : > { %711 = vadd.xlane.f32.xlu0 %v709_v39  ;;  %v717_v42 = vmul.f32 %v709_v39, %v709_v39  ;;  %v708_v43 = vmul.f32 %v958_v40, %v693_v38 }
 0x2be   : > { %719 = vadd.xlane.f32.xlu1 %v717_v42  ;;  %v710_v44 = vadd.f32 %v708_v43, %v466_v41 }
 0x2c0   : > { %713 = vadd.xlane.f32.xlu0 %v710_v44  ;;  %v718_v45 = vmul.f32 %v710_v44, %v710_v44 }
 0x2c2   : > { %721 = vadd.xlane.f32.xlu1 %v718_v45 }
 0x345   : > { %v712_v46 = vpop.xlane.xlu0 %711 }
 0x346   : > { %v715_v47 = vmul.f32 0.03125, %v712_v46 }
 0x347   : > { %v720_v48 = vpop.xlane.xlu1 %719 }
 0x348   : > { %v725_v49 = vmul.f32 %v715_v47, %v715_v47  ;;  %v723_v50 = vmul.f32 0.03125, %v720_v48  ;;  %v731_v62 = vsub.f32 %v709_v39, %v715_v47 }
 0x349   : > { %v714_v51 = vpop.xlane.xlu0 %713 }
 0x34a   : > { %v727_v52 = vsub.f32 %v723_v50, %v725_v49  ;;  %v716_v53 = vmul.f32 0.03125, %v714_v51 }
 0x34b   : > { %v722_v54 = vpop.xlane.xlu1 %721 }
 0x34c   : > { %v729_v55 = vmax.f32 %v727_v52, 0.0  ;;  %v726_v56 = vmul.f32 %v716_v53, %v716_v53  ;;  %v724_v57 = vmul.f32 0.03125, %v722_v54  ;;  %v732_v5 = vsub.f32 %v710_v44, %v716_v53 }
 0x34e   : > { %v733_v58 = vadd.f32 1e-05, %v729_v55  ;;  %v728_v59 = vsub.f32 %v724_v57, %v726_v56 }
 0x350   : > { %959 = vrsqrt.f32 %v733_v58  ;;  %v730_v60 = vmax.f32 %v728_v59, 0.0 }
 0x352   : > { %v734_v61 = vadd.f32 1e-05, %v730_v60 }
 0x354   : > { %961 = vrsqrt.f32 %v734_v61 }
 0x35d   : > { %v960_v63 = vpop.eup %959 }
 0x35e   : > { %v737_v2 = vmul.f32 %v960_v63, %v731_v62 }
 0x360   : > { %v746_v4 = vmul.f32 %v856_v1, %v737_v2 }
 0x361   : > { %v962_v6 = vpop.eup %961 }
 0x362   : > { %v755_v7 = vadd.f32 %v857_v3, %v746_v4  ;;  %v738_v8 = vmul.f32 %v962_v6, %v732_v5 }
 0x364   : > { %758 = vst.msk [vmem:[%s364_s12] sm:$0xff] %vm757_vm3, %v755_v7  ;;  %v747_v9 = vmul.f32 %v856_v1, %v738_v8 }
 0x366   : > { %v756_v10 = vadd.f32 %v857_v3, %v747_v9 }
 0x368   : > { %759 = vst.msk [vmem:[%s364_s12 + $0x8] sm:$0xff] %vm757_vm3, %v756_v10 }
 0x369 PF: > { %s21_s30 = sadd.s32 1, %s1029_s30  }
 0x36a   : > { %p18_p2 = scmp.ge.s32.totalorder %s21_s30, 6  }
 0x36c   :  { %20 = sbr.rel (!%p18_p2) target bundleno = 2 (0x2), region = 95 }
 0x371   :  { %782 = vsyncpa [#allocation3], 1 }
 0x372   :  { %784 = vsyncpa [#allocation3 + $0x1], 1 }
 0x373   :  { %785 = vsyncpa [#allocation5], 1 }

</bundles_post_ra>
